<compile_context>
chip_gen: v7x
topology: tpu7x:2x2x1
jax: 0.10.0
libtpu: 0.0.40
codegen_flags: <defaults>
</compile_context>

<pallas_src>
import functools
import math

import jax
import jax.numpy as jnp
from jax.experimental import pallas as pl
from jax.experimental.pallas import tpu as pltpu

_LANE = 128


def _focal_ce_kernel(x_ref, y_ref, out_ref, num_sc, den_sc, *,
                     n_classes, weight, masked):
    """Accumulate lane-wise partial sums of w*CE (num) and w (den)."""
    t = pl.program_id(1)

    @pl.when(t == 0)
    def _init():
        num_sc[...] = jnp.zeros_like(num_sc)
        den_sc[...] = jnp.zeros_like(den_sc)

    x = x_ref[0].astype(jnp.float32)   # (C, R, 128) logits
    y = y_ref[0, 0]                    # (R, 128) int32 labels

    # log-sum-exp over the class axis (leading dim -> element-wise across
    # vregs, no cross-lane work).
    m = x[0]
    for c in range(1, n_classes):
        m = jnp.maximum(m, x[c])
    s = jnp.exp(x[0] - m)
    for c in range(1, n_classes):
        s = s + jnp.exp(x[c] - m)
    lse = m + jnp.log(s)

    # logit of the true class via one-hot select (C is small and static).
    x_y = jnp.where(y == 0, x[0], 0.0)
    for c in range(1, n_classes):
        x_y = x_y + jnp.where(y == c, x[c], 0.0)

    ce = lse - x_y                     # per-pixel cross entropy (R, 128)

    if weight is not None:
        # Per-pixel class weight; padded pixels (label == -1) get w == 0.
        w = jnp.zeros_like(ce)
        for c in range(n_classes):
            w = jnp.where(y == c, jnp.float32(weight[c]), w)
        num = ce * w
        den = w
    elif masked:
        valid = jnp.logical_and(y >= 0, y < n_classes)
        num = jnp.where(valid, ce, 0.0)
        den = valid.astype(jnp.float32)
    else:
        num = ce
        den = jnp.ones_like(ce)

    # Cheap sublane reduce per tile; lane-wise partials stay in VMEM.
    num_sc[...] += jnp.sum(num, axis=0, keepdims=True)
    den_sc[...] += jnp.sum(den, axis=0, keepdims=True)

    @pl.when(t == pl.num_programs(1) - 1)
    def _finalize():
        out_ref[0:1, 0:1, :] = num_sc[...].reshape(1, 1, _LANE)
        out_ref[0:1, 1:2, :] = den_sc[...].reshape(1, 1, _LANE)


def _pick_row_tile(p, n_classes, target_rows):
    """Rows-of-128-pixels per grid step, honoring the (8, 128) block rule."""
    rows = max(1, -(-p // _LANE))
    # Cap the tile so one logits block stays around ~4 MiB (fits every chip's
    # default scoped VMEM with double buffering, incl. v5e's 16 MiB).
    cap = max(8, (4 * 1024 * 1024 // (n_classes * _LANE * 4)) // 8 * 8)
    target = max(8, (min(target_rows, cap) // 8) * 8)
    if rows <= target:
        return rows, rows              # whole per-batch pixel range in 1 tile
    # Prefer a divisor of `rows` (multiple of 8) so the logits need no padding.
    for d in range(target, 7, -1):
        if rows % d == 0 and d % 8 == 0 and 4 * d >= target:
            return d, rows
    return target, rows                # fall back to padding the tail


def focal_loss_pallas(inputs, targets, gamma=2.0, weight=None, tile_rows=512,
                      interpret=False):
    """Matches FocalLoss(gamma, weight).forward(inputs, targets).

    inputs : (N, C, *spatial) float logits
    targets: (N, *spatial) integer class labels in [0, C)
    returns a scalar focal loss.
    """
    N, C = inputs.shape[0], inputs.shape[1]
    P = math.prod(inputs.shape[2:]) if inputs.ndim > 2 else 1

    x = inputs.reshape(N, C, P)                  # free reshape, no transpose
    y = targets.reshape(N, P).astype(jnp.int32)  # labels stay integer

    r_tile, rows = _pick_row_tile(P, C, tile_rows)
    num_tiles = -(-rows // r_tile)
    p_pad = num_tiles * r_tile * _LANE
    masked = p_pad != P
    if masked:
        # Only when the pixel count is ragged w.r.t. the 128-lane / tile size;
        # padded labels are -1 and are masked out inside the kernel.
        x = jnp.pad(x, ((0, 0), (0, 0), (0, p_pad - P)))
        y = jnp.pad(y, ((0, 0), (0, p_pad - P)), constant_values=-1)
    r_total = p_pad // _LANE
    x = x.reshape(N, C, r_total, _LANE)
    y = y.reshape(N, 1, r_total, _LANE)

    if weight is not None:
        weight = tuple(float(v) for v in weight)
        assert len(weight) == C

    kernel = functools.partial(_focal_ce_kernel, n_classes=C, weight=weight,
                               masked=masked)

    partials = pl.pallas_call(
        kernel,
        out_shape=jax.ShapeDtypeStruct((N, 2, _LANE), jnp.float32),
        grid_spec=pltpu.PrefetchScalarGridSpec(
            num_scalar_prefetch=0,
            grid=(N, num_tiles),
            in_specs=[
                pl.BlockSpec((1, C, r_tile, _LANE), lambda n, t: (n, 0, t, 0)),
                pl.BlockSpec((1, 1, r_tile, _LANE), lambda n, t: (n, 0, t, 0)),
            ],
            out_specs=pl.BlockSpec((1, 2, _LANE), lambda n, t: (n, 0, 0)),
            scratch_shapes=[
                pltpu.VMEM((1, _LANE), jnp.float32),   # sum of w * CE
                pltpu.VMEM((1, _LANE), jnp.float32),   # sum of w (or count)
            ],
        ),
        compiler_params=pltpu.CompilerParams(
            dimension_semantics=("parallel", "arbitrary")),
        interpret=interpret,
    )(x, y)

    num = jnp.sum(partials[:, 0, :])
    den = jnp.sum(partials[:, 1, :])
    ce = num / den                     # mean-reduced (optionally weighted) CE
    pt = jnp.exp(-ce)
    return jnp.power(1.0 - pt, gamma) * ce


def _focal_loss_reference(inputs, targets, gamma=2.0, weight=None):
    """Plain-JAX transcription of the PyTorch module, for validation."""
    N, C = inputs.shape[0], inputs.shape[1]
    x = inputs.reshape(N, C, -1)
    y = targets.reshape(N, -1)
    logp = jax.nn.log_softmax(x, axis=1)
    ce_i = -jnp.take_along_axis(logp, y[:, None, :], axis=1)[:, 0, :]
    if weight is not None:
        w = jnp.asarray(weight, jnp.float32)[y]
        ce = jnp.sum(w * ce_i) / jnp.sum(w)
    else:
        ce = jnp.mean(ce_i)
    pt = jnp.exp(-ce)
    return (1.0 - pt) ** gamma * ce


if __name__ == "__main__":
    key = jax.random.PRNGKey(0)
    k1, k2, k3, k4 = jax.random.split(key, 4)

    N, C, H, W = 2, 4, 16, 16
    logits = jax.random.normal(k1, (N, C, H, W), dtype=jnp.float32)
    labels = jax.random.randint(k2, (N, H, W), 0, C, dtype=jnp.int32)

    # Unweighted (module defaults: gamma=2, weight=None).
    got = jax.block_until_ready(focal_loss_pallas(logits, labels, gamma=2.0))
    want = _focal_loss_reference(logits, labels, gamma=2.0)
    assert jnp.allclose(got, want, rtol=1e-5, atol=1e-5), (got, want)

    # Class-weighted CE path.
    wvec = [0.5, 1.0, 2.0, 1.5]
    got_w = jax.block_until_ready(
        focal_loss_pallas(logits, labels, gamma=2.0, weight=wvec))
    want_w = _focal_loss_reference(logits, labels, gamma=2.0, weight=wvec)
    assert jnp.allclose(got_w, want_w, rtol=1e-5, atol=1e-5), (got_w, want_w)

    # Ragged spatial extent -> exercises the masked tail path.
    H2 = W2 = 15
    logits2 = jax.random.normal(k3, (N, C, H2, W2), dtype=jnp.float32)
    labels2 = jax.random.randint(k4, (N, H2, W2), 0, C, dtype=jnp.int32)
    got2 = jax.block_until_ready(focal_loss_pallas(logits2, labels2, gamma=2.0))
    want2 = _focal_loss_reference(logits2, labels2, gamma=2.0)
    assert jnp.allclose(got2, want2, rtol=1e-5, atol=1e-5), (got2, want2)

    print("KERNEL_OK")
</pallas_src>

<mosaic_0001>
module attributes {stable_mosaic.version = 11 : i64} {
  func.func @_focal_ce_kernel(%arg0: i32, %arg1: i32, %arg2: memref<1x4x2x128xf32, #tpu.memory_space<vmem>>, %arg3: memref<1x1x2x128xi32, #tpu.memory_space<vmem>>, %arg4: memref<1x2x128xf32, #tpu.memory_space<vmem>>, %arg5: memref<1x128xf32, #tpu.memory_space<vmem>>, %arg6: memref<1x128xf32, #tpu.memory_space<vmem>>) attributes {dimension_semantics = [#tpu.dimension_semantics<parallel>, #tpu.dimension_semantics<arbitrary>], iteration_bounds = array<i64: 2, 1>, scalar_prefetch = 0 : i64, scratch_operands = 2 : i64, tpu.core_type = #tpu.core_type<tc>, window_params = [{transform_indices = @transform_0, window_bounds = array<i64: 1, 4, 2, 128>}, {transform_indices = @transform_1, window_bounds = array<i64: 1, 1, 2, 128>}, {transform_indices = @transform_2, window_bounds = array<i64: 1, 2, 128>}]} {
    %c0_i32 = arith.constant 0 : i32
    %0 = arith.cmpi eq, %arg1, %c0_i32 : i32
    %1 = arith.extui %0 : i1 to i32
    %c0_i32_0 = arith.constant 0 : i32
    %2 = arith.cmpi ne, %1, %c0_i32_0 : i32
    scf.if %2 {
      %cst_25 = arith.constant 0.000000e+00 : f32
      %81 = vector.broadcast %cst_25 : f32 to vector<1x128xf32>
      %c0_26 = arith.constant 0 : index
      %c0_27 = arith.constant 0 : index
      %82 = vector.load %arg5[%c0_26, %c0_27] : memref<1x128xf32, #tpu.memory_space<vmem>>, vector<1x128xf32>
      tpu.vector_store %arg5[%c0_26, %c0_27], %81 {strides = array<i32>} : memref<1x128xf32, #tpu.memory_space<vmem>>, vector<1x128xf32>,
      %cst_28 = arith.constant 0.000000e+00 : f32
      %83 = vector.broadcast %cst_28 : f32 to vector<1x128xf32>
      %c0_29 = arith.constant 0 : index
      %c0_30 = arith.constant 0 : index
      %84 = vector.load %arg6[%c0_29, %c0_30] : memref<1x128xf32, #tpu.memory_space<vmem>>, vector<1x128xf32>
      tpu.vector_store %arg6[%c0_29, %c0_30], %83 {strides = array<i32>} : memref<1x128xf32, #tpu.memory_space<vmem>>, vector<1x128xf32>,
    } else {
    }
    %c0 = arith.constant 0 : index
    %c0_1 = arith.constant 0 : index
    %c0_2 = arith.constant 0 : index
    %c0_3 = arith.constant 0 : index
    %3 = vector.load %arg2[%c0, %c0_1, %c0_2, %c0_3] : memref<1x4x2x128xf32, #tpu.memory_space<vmem>>, vector<1x4x2x128xf32>
    %4 = vector.shape_cast %3 : vector<1x4x2x128xf32> to vector<4x2x128xf32>
    %c0_4 = arith.constant 0 : index
    %c0_5 = arith.constant 0 : index
    %c0_6 = arith.constant 0 : index
    %c0_7 = arith.constant 0 : index
    %5 = vector.load %arg3[%c0_4, %c0_5, %c0_6, %c0_7] : memref<1x1x2x128xi32, #tpu.memory_space<vmem>>, vector<1x1x2x128xi32>
    %6 = vector.shape_cast %5 : vector<1x1x2x128xi32> to vector<2x128xi32>
    %7 = vector.extract_strided_slice %4 {offsets = [0, 0, 0], sizes = [1, 2, 128], strides = [1, 1, 1]} : vector<4x2x128xf32> to vector<1x2x128xf32>
    %8 = vector.shape_cast %7 : vector<1x2x128xf32> to vector<2x128xf32>
    %9 = vector.extract_strided_slice %4 {offsets = [1, 0, 0], sizes = [1, 2, 128], strides = [1, 1, 1]} : vector<4x2x128xf32> to vector<1x2x128xf32>
    %10 = vector.shape_cast %9 : vector<1x2x128xf32> to vector<2x128xf32>
    %11 = arith.maximumf %8, %10 : vector<2x128xf32>
    %12 = vector.extract_strided_slice %4 {offsets = [2, 0, 0], sizes = [1, 2, 128], strides = [1, 1, 1]} : vector<4x2x128xf32> to vector<1x2x128xf32>
    %13 = vector.shape_cast %12 : vector<1x2x128xf32> to vector<2x128xf32>
    %14 = arith.maximumf %11, %13 : vector<2x128xf32>
    %15 = vector.extract_strided_slice %4 {offsets = [3, 0, 0], sizes = [1, 2, 128], strides = [1, 1, 1]} : vector<4x2x128xf32> to vector<1x2x128xf32>
    %16 = vector.shape_cast %15 : vector<1x2x128xf32> to vector<2x128xf32>
    %17 = arith.maximumf %14, %16 : vector<2x128xf32>
    %18 = vector.extract_strided_slice %4 {offsets = [0, 0, 0], sizes = [1, 2, 128], strides = [1, 1, 1]} : vector<4x2x128xf32> to vector<1x2x128xf32>
    %19 = vector.shape_cast %18 : vector<1x2x128xf32> to vector<2x128xf32>
    %20 = arith.subf %19, %17 : vector<2x128xf32>
    %21 = math.exp %20 : vector<2x128xf32>
    %22 = vector.extract_strided_slice %4 {offsets = [1, 0, 0], sizes = [1, 2, 128], strides = [1, 1, 1]} : vector<4x2x128xf32> to vector<1x2x128xf32>
    %23 = vector.shape_cast %22 : vector<1x2x128xf32> to vector<2x128xf32>
    %24 = arith.subf %23, %17 : vector<2x128xf32>
    %25 = math.exp %24 : vector<2x128xf32>
    %26 = arith.addf %21, %25 : vector<2x128xf32>
    %27 = vector.extract_strided_slice %4 {offsets = [2, 0, 0], sizes = [1, 2, 128], strides = [1, 1, 1]} : vector<4x2x128xf32> to vector<1x2x128xf32>
    %28 = vector.shape_cast %27 : vector<1x2x128xf32> to vector<2x128xf32>
    %29 = arith.subf %28, %17 : vector<2x128xf32>
    %30 = math.exp %29 : vector<2x128xf32>
    %31 = arith.addf %26, %30 : vector<2x128xf32>
    %32 = vector.extract_strided_slice %4 {offsets = [3, 0, 0], sizes = [1, 2, 128], strides = [1, 1, 1]} : vector<4x2x128xf32> to vector<1x2x128xf32>
    %33 = vector.shape_cast %32 : vector<1x2x128xf32> to vector<2x128xf32>
    %34 = arith.subf %33, %17 : vector<2x128xf32>
    %35 = math.exp %34 : vector<2x128xf32>
    %36 = arith.addf %31, %35 : vector<2x128xf32>
    %37 = math.log %36 : vector<2x128xf32>
    %38 = arith.addf %17, %37 : vector<2x128xf32>
    %c0_i32_8 = arith.constant 0 : i32
    %39 = vector.broadcast %c0_i32_8 : i32 to vector<2x128xi32>
    %40 = arith.cmpi eq, %6, %39 : vector<2x128xi32>
    %41 = vector.extract_strided_slice %4 {offsets = [0, 0, 0], sizes = [1, 2, 128], strides = [1, 1, 1]} : vector<4x2x128xf32> to vector<1x2x128xf32>
    %42 = vector.shape_cast %41 : vector<1x2x128xf32> to vector<2x128xf32>
    %cst = arith.constant 0.000000e+00 : f32
    %43 = vector.broadcast %cst : f32 to vector<2x128xf32>
    %44 = arith.select %40, %42, %43 : vector<2x128xi1>, vector<2x128xf32>
    %c1_i32 = arith.constant 1 : i32
    %45 = vector.broadcast %c1_i32 : i32 to vector<2x128xi32>
    %46 = arith.cmpi eq, %6, %45 : vector<2x128xi32>
    %47 = vector.extract_strided_slice %4 {offsets = [1, 0, 0], sizes = [1, 2, 128], strides = [1, 1, 1]} : vector<4x2x128xf32> to vector<1x2x128xf32>
    %48 = vector.shape_cast %47 : vector<1x2x128xf32> to vector<2x128xf32>
    %cst_9 = arith.constant 0.000000e+00 : f32
    %49 = vector.broadcast %cst_9 : f32 to vector<2x128xf32>
    %50 = arith.select %46, %48, %49 : vector<2x128xi1>, vector<2x128xf32>
    %51 = arith.addf %44, %50 : vector<2x128xf32>
    %c2_i32 = arith.constant 2 : i32
    %52 = vector.broadcast %c2_i32 : i32 to vector<2x128xi32>
    %53 = arith.cmpi eq, %6, %52 : vector<2x128xi32>
    %54 = vector.extract_strided_slice %4 {offsets = [2, 0, 0], sizes = [1, 2, 128], strides = [1, 1, 1]} : vector<4x2x128xf32> to vector<1x2x128xf32>
    %55 = vector.shape_cast %54 : vector<1x2x128xf32> to vector<2x128xf32>
    %cst_10 = arith.constant 0.000000e+00 : f32
    %56 = vector.broadcast %cst_10 : f32 to vector<2x128xf32>
    %57 = arith.select %53, %55, %56 : vector<2x128xi1>, vector<2x128xf32>
    %58 = arith.addf %51, %57 : vector<2x128xf32>
    %c3_i32 = arith.constant 3 : i32
    %59 = vector.broadcast %c3_i32 : i32 to vector<2x128xi32>
    %60 = arith.cmpi eq, %6, %59 : vector<2x128xi32>
    %61 = vector.extract_strided_slice %4 {offsets = [3, 0, 0], sizes = [1, 2, 128], strides = [1, 1, 1]} : vector<4x2x128xf32> to vector<1x2x128xf32>
    %62 = vector.shape_cast %61 : vector<1x2x128xf32> to vector<2x128xf32>
    %cst_11 = arith.constant 0.000000e+00 : f32
    %63 = vector.broadcast %cst_11 : f32 to vector<2x128xf32>
    %64 = arith.select %60, %62, %63 : vector<2x128xi1>, vector<2x128xf32>
    %65 = arith.addf %58, %64 : vector<2x128xf32>
    %66 = arith.subf %38, %65 : vector<2x128xf32>
    %cst_12 = arith.constant 1.000000e+00 : f32
    %67 = vector.broadcast %cst_12 : f32 to vector<2x128xf32>
    %c0_13 = arith.constant 0 : index
    %c0_14 = arith.constant 0 : index
    %68 = vector.load %arg5[%c0_13, %c0_14] : memref<1x128xf32, #tpu.memory_space<vmem>>, vector<1x128xf32>
    %cst_15 = arith.constant dense<0.000000e+00> : vector<128xf32>
    %69 = vector.multi_reduction <add>, %66, %cst_15 [0] : vector<2x128xf32> to vector<128xf32>
    %70 = vector.shape_cast %69 : vector<128xf32> to vector<1x128xf32>
    %71 = arith.addf %68, %70 : vector<1x128xf32>
    %c0_16 = arith.constant 0 : index
    %c0_17 = arith.constant 0 : index
    %72 = vector.load %arg5[%c0_16, %c0_17] : memref<1x128xf32, #tpu.memory_space<vmem>>, vector<1x128xf32>
    tpu.vector_store %arg5[%c0_16, %c0_17], %71 {strides = array<i32>} : memref<1x128xf32, #tpu.memory_space<vmem>>, vector<1x128xf32>,
    %c0_18 = arith.constant 0 : index
    %c0_19 = arith.constant 0 : index
    %73 = vector.load %arg6[%c0_18, %c0_19] : memref<1x128xf32, #tpu.memory_space<vmem>>, vector<1x128xf32>
    %cst_20 = arith.constant dense<0.000000e+00> : vector<128xf32>
    %74 = vector.multi_reduction <add>, %67, %cst_20 [0] : vector<2x128xf32> to vector<128xf32>
    %75 = vector.shape_cast %74 : vector<128xf32> to vector<1x128xf32>
    %76 = arith.addf %73, %75 : vector<1x128xf32>
    %c0_21 = arith.constant 0 : index
    %c0_22 = arith.constant 0 : index
    %77 = vector.load %arg6[%c0_21, %c0_22] : memref<1x128xf32, #tpu.memory_space<vmem>>, vector<1x128xf32>
    tpu.vector_store %arg6[%c0_21, %c0_22], %76 {strides = array<i32>} : memref<1x128xf32, #tpu.memory_space<vmem>>, vector<1x128xf32>,
    %c0_i32_23 = arith.constant 0 : i32
    %78 = arith.cmpi eq, %arg1, %c0_i32_23 : i32
    %79 = arith.extui %78 : i1 to i32
    %c0_i32_24 = arith.constant 0 : i32
    %80 = arith.cmpi ne, %79, %c0_i32_24 : i32
    scf.if %80 {
      %c0_25 = arith.constant 0 : index
      %c0_26 = arith.constant 0 : index
      %81 = vector.load %arg5[%c0_25, %c0_26] : memref<1x128xf32, #tpu.memory_space<vmem>>, vector<1x128xf32>
      %82 = vector.shape_cast %81 : vector<1x128xf32> to vector<1x1x128xf32>
      %c0_27 = arith.constant 0 : index
      %c0_28 = arith.constant 0 : index
      %c0_29 = arith.constant 0 : index
      %83 = vector.load %arg4[%c0_27, %c0_28, %c0_29] : memref<1x2x128xf32, #tpu.memory_space<vmem>>, vector<1x1x128xf32>
      tpu.vector_store %arg4[%c0_27, %c0_28, %c0_29], %82 {strides = array<i32>} : memref<1x2x128xf32, #tpu.memory_space<vmem>>, vector<1x1x128xf32>,
      %c0_30 = arith.constant 0 : index
      %c0_31 = arith.constant 0 : index
      %84 = vector.load %arg6[%c0_30, %c0_31] : memref<1x128xf32, #tpu.memory_space<vmem>>, vector<1x128xf32>
      %85 = vector.shape_cast %84 : vector<1x128xf32> to vector<1x1x128xf32>
      %c0_32 = arith.constant 0 : index
      %c1 = arith.constant 1 : index
      %c0_33 = arith.constant 0 : index
      %86 = vector.load %arg4[%c0_32, %c1, %c0_33] : memref<1x2x128xf32, #tpu.memory_space<vmem>>, vector<1x1x128xf32>
      tpu.vector_store %arg4[%c0_32, %c1, %c0_33], %85 {strides = array<i32>} : memref<1x2x128xf32, #tpu.memory_space<vmem>>, vector<1x1x128xf32>,
    } else {
    }
    return
  }
  func.func @transform_0(%arg0: i32, %arg1: i32) -> (i32, i32, i32, i32) {
    %c0_i32 = arith.constant 0 : i32
    %c0_i32_0 = arith.constant 0 : i32
    %c0_i32_1 = arith.constant 0 : i32
    return %arg0, %c0_i32, %arg1, %c0_i32_0 : i32, i32, i32, i32
  }
  func.func @transform_1(%arg0: i32, %arg1: i32) -> (i32, i32, i32, i32) {
    %c0_i32 = arith.constant 0 : i32
    %c0_i32_0 = arith.constant 0 : i32
    %c0_i32_1 = arith.constant 0 : i32
    return %arg0, %c0_i32, %arg1, %c0_i32_0 : i32, i32, i32, i32
  }
  func.func @transform_2(%arg0: i32, %arg1: i32) -> (i32, i32, i32) {
    %c0_i32 = arith.constant 0 : i32
    %c0_i32_0 = arith.constant 0 : i32
    %c0_i32_1 = arith.constant 0 : i32
    return %arg0, %c0_i32, %c0_i32_0 : i32, i32, i32
  }
}

</mosaic_0001>

<bundles_post_ra>
// kernel: tpu_custom_call.1
= control target key start
LH: loop header
LB: loop body
LE: loop exit
PB: predicated region body
PF: predicated region fallthrough
CT: control target
= control target key end

     0   :  { %7 = vsyncpa [#allocation5], 0  ;;  %s903_s0 = inlined_call_operand.hbm [shape: f32[2,4,2,128], index: 0, kind: input, shape index: {}]   ;;  %s904_s1 = inlined_call_operand.hbm [shape: s32[2,1,2,128], index: 1, kind: input, shape index: {}]   ;;  %s905_s2 = inlined_call_operand.hbm [shape: f32[2,2,128], index: 2, kind: output, shape index: {}]  }
   0x1   :  { %9 = vsyncpa [#allocation5 + $0x1], 0 }
   0x2   :  { %10 = vsyncpa [#allocation8], 0 }
   0x3   :  { %12 = vsyncpa [#allocation8 + $0x1], 0 }
   0x4   :  { %13 = vsyncpa [#allocation6], 0 }
   0x5   :  { %15 = vsyncpa [#allocation6 + $0x1], 0  ;;  %s674_s9 = smov 0   ;;  %s676_s10 = smov 0  }
   0x6   :  { %s678_s11 = smov 0   ;;  %s680_s12 = smov 0  }
   0x7   :  { %s682_s13 = smov 0   ;;  %s684_s14 = smov 0  }
   0x8 LB: > { %s407_s15 = sadd.s32 4294967295, %s651_s14   ;;  %s408_s16 = sadd.s32 4294967294, %s651_s14   ;;  %s651_s14 = sphi %s684_s14, %s21_s14   ;;  %s647_s13 = sphi %s682_s13, %s924_s13   ;;  %s643_s12 = sphi %s680_s12, %s923_s12   ;;  %s639_s11 = sphi %s678_s11, %s922_s11   ;;  %s635_s10 = sphi %s676_s10, %s921_s10   ;;  %s631_s9 = sphi %s674_s9, %s920_s9  }
   0x9   : > { %s33_s17 = sadd.s32 1, %s647_s13  ;;  %s42_s18 = sadd.s32 1, %s639_s11 }
   0xa   : > { %p35_p0 = scmp.ge.s32.totalorder %s33_s17, 2  ;;  %p49_p1 = scmp.ne.s32.totalorder %s639_s11, %s635_s10 }
   0xb   : > { %p50_p2 = scmp.eq.s32.totalorder %s651_s14, 0  ;;  %p55_p3 = scmp.ne.s32.totalorder %s635_s10, %s631_s9 }
   0xc   : > { %s926_s17 = smov (%p35_p0, %s33_s17), 0  ;;  %p56_p5 = scmp.eq.s32.totalorder %s407_s15, 0 }
   0xd   : > { %p715_p4 = por %p50_p2, %p49_p1  ;;  %s37_s20 = ssub.s32 %s647_s13, %s926_s17 }
   0xe   : > { %p107_p6 = scmp.eq.s32.totalorder %s407_s15, 1  ;;  %p40_p7 = scmp.eq.s32.totalorder %s37_s20, 0 }
   0xf   : > { %p721_p8 = por %p56_p5, %p55_p3  ;;  %p113_p10 = scmp.eq.s32.totalorder %s408_s16, 1 }
  0x10   : > { %p725_p9 = por %p107_p6, %p49_p1  ;;  %p442_p13 = scmp.lt.s32.totalorder %s651_s14, 2 }
  0x11   : > { %s909_s21 = scalar_select %p721_p8, 1, 0 }
  0x12   : > { %s910_s22 = scalar_select %p725_p9, 1, 0 }
  0x13   : > { %s730_s23 = scalar_select %p40_p7, %s639_s11, %s42_s18  }
  0x14   : > { %p732_p11 = por %p113_p10, %p55_p3  ;;  %s739_s25 = sand.u32 1, %s639_s11  }
  0x15   : > { %s411_s26 = sshll.u32 %s739_s25, 3  ;;  %s424_s27 = sshll.u32 %s647_s13, 7 }
  0x16   : > { %s911_s24 = scalar_select %p732_p11, 1, 0 }
  0x17   : > { %s746_s30 = scalar_lea.hbm %s903_s0, %s424_s27  ;;  %s137_s3 = scalar_lea.vmem [#allocation4], %s411_s26 }
  0x18   : > { %s145_s4 = sshll.u32 %s137_s3, 4  ;;  %p752_p0 = pnand %p442_p13, %p715_p4  ;;  %s748_s4 = int_to_ptr.vmem [resolvable:$true] %s145_s4 }
  0x19   : > { %s134_s6 = scalar_lea.sflag [#allocation5], %s739_s25  ;;  %s505_s7 = scalar_lea.hbm %s746_s30, 128 }
  0x1a   : > { %p506_p2 = scmp.ne.s32.totalorder %s746_s30, %s505_s7  ;;  %p507_p3 = pneg %p752_p0 }
  0x1b   : > { %s510_s16 = scalar_lea.hbm %s903_s0, 256  ;;  %p511_p4 = scmp.lt.u32.totalorder %s746_s30, %s903_s0 }
  0x1c   : > { %p508_p5 = pnand %p507_p3, %p506_p2  ;;  %p512_p7 = scmp.lt.u32.totalorder %s510_s16, %s505_s7 }
  0x1d   : > { %p514_p13 = scmp.lt.u32.totalorder %s505_s7, %s746_s30 }
  0x1e   : > { %p509_p6 = pneg %p508_p5  ;;  %p513_p10 = por %p512_p7, %p511_p4 }
  0x20   : > { %p515_p12 = por %p514_p13, %p513_p10 }
  0x22   : > { %p516_p1 = pnand %p515_p12, %p509_p6 }
  0x24   : > { %519 = shalt.err (!%p516_p1)
}
  0x25   : > { %s520_s20 = scalar_lea.vmem %s748_s4, 128  ;;  %s653_s26 = smov [#allocation4]  }
  0x26   : > { %p521_p2 = scmp.ne.s32.totalorder %s748_s4, %s520_s20  ;;  %s525_s27 = sshll.u32 %s653_s26, 4  ;;  %s526_s27 = int_to_ptr.vmem [resolvable:$false] %s525_s27 }
  0x27   : > { %s527_s28 = scalar_lea.vmem %s526_s27, 256  ;;  %p528_p9 = scmp.lt.s32.totalorder %s748_s4, %s526_s27 }
  0x28   : > { %p523_p5 = pnand %p521_p2, %p507_p3  ;;  %p529_p4 = scmp.lt.s32.totalorder %s527_s28, %s520_s20 }
  0x2a   : > { %p524_p11 = pneg %p523_p5  ;;  %p530_p7 = por %p529_p4, %p528_p9 }
  0x2c   : > { %p531_p10 = pnand %p530_p7, %p524_p11 }
  0x2e   : > { %534 = shalt.err (!%p531_p10)
}
  0x2f   : > { %s654_s29 = smov 32   ;;  %s655_s3 = smov 2  }
  0x30   : > { %434 = dma.hbm_to_vmem [thread:$0]  (!%p752_p0), %s746_s30, 128, %s748_s4, %s134_s6, %s654_s29, %s654_s29, %s655_s3  }
  0x31   : > { %p172_p12 = scmp.lt.s32.totalorder %s651_s14, 3  ;;  %s414_s7 = sshll.u32 %s739_s25, 1 }
  0x32   : > { %s415_s8 = sshll.u32 %s647_s13, 5  ;;  %p913_p9 = scmp.ge.s32.totalorder %s651_s14, 1 }
  0x33   : > { %s797_s19 = scalar_lea.hbm %s904_s1, %s415_s8  ;;  %s159_s20 = scalar_lea.vmem [#allocation7], %s414_s7 }
  0x34   : > { %p790_p11 = pnand %p913_p9, %p172_p12  ;;  %s167_s26 = sshll.u32 %s159_s20, 4  ;;  %s168_s26 = int_to_ptr.vmem [resolvable:$true] %s167_s26 }
  0x35   : > { %s156_s30 = scalar_lea.sflag [#allocation8], %s739_s25  ;;  %s535_s4 = scalar_lea.hbm %s797_s19, 32 }
  0x36   : > { %s914_s15 = scalar_select %p790_p11, 1, 0 }
  0x37   : > { %p536_p1 = scmp.ne.s32.totalorder %s797_s19, %s535_s4  ;;  %s540_s28 = scalar_lea.hbm %s904_s1, 64 }
  0x38   : > { %p541_p2 = scmp.lt.u32.totalorder %s797_s19, %s904_s1  ;;  %p542_p5 = scmp.lt.u32.totalorder %s540_s28, %s535_s4 }
  0x39   : > { %p538_p6 = pnand %p536_p1, %p507_p3  ;;  %p544_p7 = scmp.lt.u32.totalorder %s535_s4, %s797_s19 }
  0x3a   : > { %p543_p4 = por %p542_p5, %p541_p2 }
  0x3b   : > { %p539_p13 = pneg %p538_p6 }
  0x3c   : > { %p545_p10 = por %p544_p7, %p543_p4 }
  0x3e   : > { %p546_p12 = pnand %p545_p10, %p539_p13 }
  0x40   : > { %549 = shalt.err (!%p546_p12)
}
  0x41   : > { %s550_s25 = scalar_lea.vmem %s168_s26, 32  ;;  %s656_s7 = smov [#allocation7]  }
  0x42   : > { %p551_p9 = scmp.ne.s32.totalorder %s168_s26, %s550_s25  ;;  %s555_s8 = sshll.u32 %s656_s7, 4  ;;  %s556_s8 = int_to_ptr.vmem [resolvable:$false] %s555_s8 }
  0x43   : > { %s557_s16 = scalar_lea.vmem %s556_s8, 64  ;;  %p558_p8 = scmp.lt.s32.totalorder %s168_s26, %s556_s8 }
  0x44   : > { %p553_p1 = pnand %p551_p9, %p507_p3  ;;  %p559_p11 = scmp.lt.s32.totalorder %s557_s16, %s550_s25 }
  0x46   : > { %p554_p6 = pneg %p553_p1  ;;  %p560_p2 = por %p559_p11, %p558_p8 }
  0x48   : > { %p561_p5 = pnand %p560_p2, %p554_p6 }
  0x4a   : > { %564 = shalt.err (!%p561_p5)
}
  0x4b   : > { %437 = dma.hbm_to_vmem [thread:$0]  (!%p752_p0), %s797_s19, 32, %s168_s26, %s156_s30  }
  0x4c   : > { %p915_p13 = scmp.ne.s32.totalorder %s914_s15, 0 }
  0x4d   : > { %s822_s18 = sand.u32 (!%p915_p13), 1, %s635_s10   ;;  %p916_p3 = scmp.ne.s32.totalorder (!%p915_p13), %s909_s21, 0 }
  0x4e   : > { %176 = sbr.rel (%p915_p13) target bundleno = 174 (0xae), region = 28  ;;  %s417_s20 = sshll.u32 (!%p915_p13), %s822_s18, 3 }
  0x4f   : > { %s179_s4 = scalar_lea.sflag (!%p915_p13), [#allocation5], %s822_s18  ;;  %s182_s6 = scalar_lea.vmem (!%p915_p13), [#allocation4], %s417_s20 }
  0x55   : > { %618 = dma.done.wait (%p916_p3), %s179_s4, 128  }
  0x56   : > { %620 = vsyncadd (%p916_p3), %s179_s4, 4294967168  ;;  %s418_s5 = sshll.u32 %s822_s18, 1  ;;  %s188_s15 = scalar_lea.sflag [#allocation8], %s822_s18 }
  0x57   : > { %s834_s19 = scalar_lea.vmem [#allocation7], %s418_s5 }
  0x58   : > { %622 = dma.done.wait (%p916_p3), %s188_s15, 32  }
  0x59   : > { %624 = vsyncadd (%p916_p3), %s188_s15, 4294967264  ;;  %vm262_vm0 = vcmask 1041408   ;;  %v657_v0 = vmov 0.0   ;;  %v223_v5 = vld [vmem:[%s182_s6] sm:$0x3]  ;;  %s843_s21 = scalar_lea.vmem [#allocation9], %s418_s5 }
  0x5a   : > { %221 = vst [vmem:[#allocation2] sm:$0x1] %v657_v0  ;;  %v273_v1 = vsel %vm262_vm0, 1.0, %v657_v0  ;;  %222 = vst [vmem:[#allocation3] sm:$0x1] %v657_v0  ;;  %s303_s26 = sshll.u32 %s843_s21, 4  ;;  %s850_s26 = int_to_ptr.vmem [resolvable:$true] %s303_s26 }
  0x5b   : > { %v274_v2 = vrot.slane %v273_v1, 4  ;;  %v224_v6 = vld [vmem:[%s182_s6 + $0x2] sm:$0x3]  ;;  %v225_v7 = vld [vmem:[%s182_s6 + $0x4] sm:$0x3]  ;;  %s421_s30 = sshll.u32 %s643_s12, 5 }
  0x5c   : > { %v228_v8 = vmax.f32 %v223_v5, %v224_v6  ;;  %v226_v10 = vld [vmem:[%s182_s6 + $0x6] sm:$0x3]  ;;  %v227_v29 = vld [vmem:[%s834_s19] sm:$0x3]  ;;  %s855_s29 = scalar_lea.hbm %s905_s2, %s421_s30  ;;  %s290_s3 = scalar_lea.sflag [#allocation6], %s822_s18 }
  0x5d   : > { %v275_v3 = vadd.f32 %v274_v2, %v273_v1  ;;  %vm249_vm1 = vcmp.eq.s32.totalorder %v227_v29, 0  ;;  %vm251_vm2 = vcmp.eq.s32.totalorder %v227_v29, 1  ;;  %vm254_vm3 = vcmp.eq.s32.totalorder %v227_v29, 2  ;;  %s565_s25 = scalar_lea.vmem %s850_s26, 32  ;;  %p917_p0 = scmp.ne.s32.totalorder %s910_s22, 0 }
  0x5e   : > { %v229_v11 = vmax.f32 %v228_v8, %v225_v7  ;;  %v250_v34 = vsel %vm249_vm1, %v223_v5, 0.0  ;;  %v252_v35 = vsel %vm251_vm2, %v224_v6, 0.0  ;;  %v255_v37 = vsel %vm254_vm3, %v225_v7, 0.0  ;;  %p566_p8 = scmp.ne.s32.totalorder %s850_s26, %s565_s25  ;;  %s658_s7 = smov [#allocation9]  }
  0x5f   : > { %v276_v4 = vrot.slane %v275_v3, 2  ;;  %v253_v36 = vadd.f32 %v252_v35, %v250_v34  ;;  %vm257_vm4 = vcmp.eq.s32.totalorder %v227_v29, 3  ;;  %s569_s12 = sshll.u32 %s658_s7, 4  ;;  %s570_s12 = int_to_ptr.vmem [resolvable:$false] %s569_s12 }
  0x60   : > { %v230_v13 = vmax.f32 %v229_v11, %v226_v10  ;;  %v258_v39 = vsel %vm257_vm4, %v226_v10, 0.0  ;;  %p567_p11 = pnand %p566_p8, %p917_p0  ;;  %s571_s8 = scalar_lea.vmem %s570_s12, 64 }
  0x61   : > { %v277_v9 = vadd.f32 %v276_v4, %v275_v3  ;;  %v272_v14 = vld [vmem:[#allocation3] sm:$0x1]  ;;  %v256_v38 = vadd.f32 %v255_v37, %v253_v36  ;;  %v261_v51 = vld [vmem:[#allocation2] sm:$0x1]  ;;  %p572_p7 = scmp.lt.s32.totalorder %s850_s26, %s570_s12  ;;  %p573_p10 = scmp.lt.s32.totalorder %s571_s8, %s565_s25 }
  0x62   : > { %v231_v16 = vsub.f32 %v223_v5, %v230_v13  ;;  %v234_v17 = vsub.f32 %v224_v6, %v230_v13  ;;  %v238_v18 = vsub.f32 %v225_v7, %v230_v13  ;;  %v242_v19 = vsub.f32 %v226_v10, %v230_v13  ;;  %p568_p4 = pneg %p567_p11 }
  0x63   : > { %v278_v12 = vrot.slane %v277_v9, 1  ;;  %v259_v42 = vadd.f32 %v258_v39, %v256_v38  ;;  %p574_p12 = por %p573_p10, %p572_p7 }
  0x64   : > { %v232_v21 = vmul.f32 1.442695, %v231_v16  ;;  %v235_v22 = vmul.f32 1.442695, %v234_v17  ;;  %v239_v23 = vmul.f32 1.442695, %v238_v18 }
  0x65   : > { %v279_v15 = vadd.f32 %v278_v12, %v277_v9  ;;  %v243_v24 = vmul.f32 1.442695, %v242_v19  ;;  %p575_p9 = pnand %p574_p12, %p568_p4 }
  0x66   : > { %495 = vpow2.f32 %v232_v21 }
  0x67   : > { %v280_v20 = vadd.f32 %v279_v15, %v272_v14  ;;  %497 = vpow2.f32 %v235_v22 }
  0x68   : > { %499 = vpow2.f32 %v239_v23 }
  0x69   : > { %281 = vst [vmem:[#allocation3] sm:$0x1] %v280_v20  ;;  %501 = vpow2.f32 %v243_v24 }
  0x70   : > { %v287_v25 = vld [vmem:[#allocation3] sm:$0x1]  ;;  %v496_v26 = vpop.eup %495 }
  0x71   : > { %288 = vst [vmem:[%s843_s21 + $0x1] sm:$0x1] %v287_v25  ;;  %v498_v27 = vpop.eup %497 }
  0x72   : > { %v500_v28 = vpop.eup %499  ;;  %v237_v30 = vadd.f32 %v498_v27, %v496_v26 }
  0x73   : > { %v502_v31 = vpop.eup %501 }
  0x74   : > { %v241_v32 = vadd.f32 %v500_v28, %v237_v30 }
  0x76   : > { %v245_v33 = vadd.f32 %v502_v31, %v241_v32 }
  0x78   : > { %503 = vlog2.f32 %v245_v33 }
  0x82   : > { %v504_v40 = vpop.eup %503 }
  0x83   : > { %v247_v41 = vmul.f32 0.6931472, %v504_v40 }
  0x85   : > { %v248_v43 = vadd.f32 %v247_v41, %v230_v13 }
  0x87   : > { %v260_v44 = vsub.f32 %v248_v43, %v259_v42 }
  0x89   : > { %v263_v45 = vsel %vm262_vm0, %v260_v44, 0.0 }
  0x8a   : > { %v264_v46 = vrot.slane %v263_v45, 4 }
  0x8c   : > { %v265_v47 = vadd.f32 %v264_v46, %v263_v45 }
  0x8e   : > { %v266_v48 = vrot.slane %v265_v47, 2 }
  0x90   : > { %v267_v49 = vadd.f32 %v266_v48, %v265_v47 }
  0x92   : > { %v268_v50 = vrot.slane %v267_v49, 1 }
  0x94   : > { %v269_v52 = vadd.f32 %v268_v50, %v267_v49 }
  0x96   : > { %v270_v53 = vadd.f32 %v269_v52, %v261_v51 }
  0x98   : > { %271 = vst [vmem:[#allocation2] sm:$0x1] %v270_v53 }
  0x9f   : > { %v285_v54 = vld [vmem:[#allocation2] sm:$0x1] }
  0xa0   : > { %286 = vst [vmem:[%s843_s21] sm:$0x1] %v285_v54 }
  0xa1   : > { %578 = shalt.err (!%p575_p9)
}
  0xa2   : > { %s579_s16 = scalar_lea.hbm %s855_s29, 32  ;;  %s583_s4 = scalar_lea.hbm %s905_s2, 64 }
  0xa3   : > { %p580_p1 = scmp.ne.s32.totalorder %s855_s29, %s579_s16  ;;  %p584_p5 = scmp.lt.u32.totalorder %s855_s29, %s905_s2 }
  0xa4   : > { %p585_p13 = scmp.lt.u32.totalorder %s583_s4, %s579_s16  ;;  %p587_p8 = scmp.lt.u32.totalorder %s579_s16, %s855_s29 }
  0xa5   : > { %p581_p6 = pnand %p580_p1, %p917_p0 }
  0xa6   : > { %p586_p3 = por %p585_p13, %p584_p5 }
  0xa7   : > { %p582_p2 = pneg %p581_p6 }
  0xa8   : > { %p588_p11 = por %p587_p8, %p586_p3 }
  0xaa   : > { %p589_p4 = pnand %p588_p11, %p582_p2 }
  0xac   : > { %592 = shalt.err (!%p589_p4)
}
  0xad   : > { %429 = dma.vmem_to_hbm [thread:$0]  (%p917_p0), %s850_s26, 32, %s855_s29, %s290_s3  }
  0xae PF: > { %s315_s15 = sand.u32 1, %s631_s9   ;;  %p918_p7 = scmp.ne.s32.totalorder %s911_s24, 0 }
  0xaf   : > { %p919_p10 = scmp.ge.s32.totalorder %s651_s14, 2  ;;  %s316_s19 = scalar_lea.sflag [#allocation6], %s315_s15 }
  0xb1   : > { %p439_p12 = pnand %p919_p10, %p918_p7 }
  0xb3   : > { %626 = dma.done.wait (!%p439_p12), %s316_s19, 32  }
  0xb4   : > { %628 = vsyncadd (!%p439_p12), %s316_s19, 4294967264  ;;  %s21_s14 = sadd.s32 1, %s651_s14   ;;  %s920_s9 = smov %s635_s10 }
  0xb5   : > { %p18_p9 = scmp.ge.s32.totalorder %s21_s14, 4   ;;  %s921_s10 = smov %s639_s11 }
  0xb6   : > { %s922_s11 = smov %s730_s23  ;;  %s923_s12 = smov %s647_s13 }
  0xb7   : > { %s924_s13 = smov %s926_s17  ;;  %20 = sbr.rel (!%p18_p9) target bundleno = 8 (0x8), region = 94 }
  0xbe   :  { %321 = vsyncpa [#allocation5], 1 }
  0xbf   :  { %323 = vsyncpa [#allocation5 + $0x1], 1 }
  0xc0   :  { %324 = vsyncpa [#allocation8], 1 }
  0xc1   :  { %326 = vsyncpa [#allocation8 + $0x1], 1 }
  0xc2   :  { %327 = vsyncpa [#allocation6], 1 }
  0xc3   :  { %329 = vsyncpa [#allocation6 + $0x1], 1 }

</bundles_post_ra>
